<compile_context>
chip_gen: v5e
topology: v5e:2x2
jax: 0.10.0
libtpu: 0.0.40
codegen_flags: <defaults>
</compile_context>

<pallas_src>
import functools

import jax
import jax.numpy as jnp
from jax import lax
from jax.experimental import pallas as pl
from jax.experimental.pallas import tpu as pltpu

_MIB = 1024 * 1024


def _round_up(x, m):
    return ((x + m - 1) // m) * m


def _flash_attn_kernel(q_ref, k_ref, v_ref, o_ref, m_sc, l_sc, *rest,
                       scale_val, lk, lk_pad, tk):
    """One (batch-block, q-block, kv-block) flash-attention grid step."""
    # acc is either a dedicated f32 scratch (non-f32 outputs) or the output
    # block itself (f32 outputs stay VMEM-resident across the kv axis).
    acc = rest[0] if rest else o_ref
    kv = pl.program_id(2)

    @pl.when(kv == 0)
    def _():
        m_sc[...] = jnp.full_like(m_sc, -jnp.inf)
        l_sc[...] = jnp.zeros_like(l_sc)
        acc[...] = jnp.zeros_like(acc)

    q = q_ref[...]
    if scale_val:                      # static truthiness: matches PyTorch `if scale:`
        q = q * scale_val              # fold scale into q (Lq*D mults, not Lq*Lk)

    # bf16 MXU operands (native rate on v5e/v6e/v7x), f32 accumulation.
    q16 = q.astype(jnp.bfloat16)
    k16 = k_ref[...].astype(jnp.bfloat16)

    # s[b,i,j] = sum_d q[b,i,d] * k[b,j,d]   (NT contraction, no explicit k.T)
    s = lax.dot_general(
        q16, k16,
        dimension_numbers=(((2,), (2,)), ((0,), (0,))),
        preferred_element_type=jnp.float32)

    if lk_pad != lk:
        # Only the final kv tile has zero-padded key columns; gate the mask
        # work out of the steady state.
        tail_valid = lk - (lk_pad - tk)

        def _mask_tail(sv):
            col = lax.broadcasted_iota(jnp.int32, sv.shape, 2)
            return jnp.where(col < tail_valid, sv, -1e30)

        s = lax.cond(kv == pl.num_programs(2) - 1, _mask_tail, lambda sv: sv, s)

    # Online softmax (f32 math).
    m_prev = m_sc[...]
    m_new = jnp.maximum(m_prev, jnp.max(s, axis=-1, keepdims=True))
    alpha = jnp.exp(m_prev - m_new)
    p = jnp.exp(s - m_new)
    l_sc[...] = alpha * l_sc[...] + jnp.sum(p, axis=-1, keepdims=True)

    # acc[b,i,d] += sum_j p[b,i,j] * v[b,j,d]   (bf16 operands, f32 accumulate)
    pv = lax.dot_general(
        p.astype(jnp.bfloat16), v_ref[...].astype(jnp.bfloat16),
        dimension_numbers=(((2,), (1,)), ((0,), (0,))),
        preferred_element_type=jnp.float32)
    acc[...] = alpha * acc[...] + pv
    m_sc[...] = m_new

    # Dropout(p=0.5) is identity in eval mode.

    @pl.when(kv == pl.num_programs(2) - 1)
    def _():
        inv_l = pl.reciprocal(l_sc[...], approx=True)
        o_ref[...] = (acc[...] * inv_l).astype(o_ref.dtype)


def _pick_tiles(B, Lq, Lk, D, esize, acc_in_out):
    """Generation-aware tile sizes + VMEM limit (counts double-buffering)."""
    try:
        info = pltpu.get_tpu_info()
        vmem_cap = int(getattr(info, "vmem_capacity_bytes", 64 * _MIB))
    except Exception:
        vmem_cap = 64 * _MIB                       # conservative (v7x)

    small_vmem = vmem_cap <= 64 * _MIB             # v7x: 64 MiB; v5e/v6e: 128 MiB
    budget = 14 * _MIB if small_vmem else 28 * _MIB

    # Prefer block == full dim: no wrapper-side pad and no output slice.
    tq = Lq if Lq <= 512 else 512
    tk = Lk if Lk <= 1024 else 1024

    def live_bytes(bb, tq_, tk_):
        q_t = bb * tq_ * D * esize                 # q tile
        kv_t = bb * tk_ * D * esize                # k or v tile
        o_t = bb * tq_ * D * esize                 # o tile
        acc = 0 if acc_in_out else bb * tq_ * D * 4
        s_t = bb * tq_ * tk_ * 4                   # score / prob temporaries
        ml = 2 * bb * tq_ * 4                      # m / l scratch
        return 2 * (q_t + 2 * kv_t + o_t) + acc + 2 * s_t + ml

    # Shrink tq / tk until a single batch element fits the budget.
    while live_bytes(1, tq, tk) > budget and max(tq, tk) > 128:
        if tk >= tq:
            tk = max(128, tk // 2)
        else:
            tq = max(128, tq // 2)

    # Fold batch elements per grid step (amortize ~0.35us/step, feed the MXU),
    # but (a) keep Bb a divisor of B so no batch padding is introduced and
    # (b) leave >= 2 parallel grid steps for the megacore when possible.
    bb_cap = B
    if Lq <= tq and B >= 2:
        bb_cap = max(1, B // 2)
    bb_max = 1
    while bb_max < bb_cap and live_bytes(bb_max * 2, tq, tk) <= budget:
        bb_max *= 2
    bb_max = max(1, min(bb_max, bb_cap))
    Bb = 1
    for d in range(1, bb_max + 1):
        if B % d == 0:
            Bb = d

    cap = 48 * _MIB if small_vmem else 100 * _MIB
    vmem_limit = max(32 * _MIB,
                     min(cap, int(live_bytes(Bb, tq, tk) * 1.25) + 8 * _MIB))
    return Bb, tq, tk, vmem_limit


def multimodal_attention(q, k, v, scale=None, attn_mask=None):
    """Pallas TPU forward of MCAN multimodal_attention.

    q: [B, Lq, D], k: [B, Lk, D], v: [B, Lk, D] -> [B, Lq, D] (q's dtype).
    """
    assert attn_mask is None, "TODO(synk): attn_mask not supported"
    if scale is not None:
        scale = float(scale)          # static scale required (raises on tracers)

    B, Lq, D = q.shape
    _, Lk, _ = k.shape
    assert k.shape == (B, Lk, D) and v.shape == (B, Lk, D)

    acc_in_out = q.dtype == jnp.float32            # f32 output: accumulate in o_ref
    esize = jnp.dtype(q.dtype).itemsize
    Bb, tq, tk, vmem_limit = _pick_tiles(B, Lq, Lk, D, esize, acc_in_out)

    B_pad = _round_up(B, Bb)                       # == B (Bb divides B)
    Lq_pad = _round_up(Lq, tq)
    Lk_pad = _round_up(Lk, tk)

    def pad_bl(x, l_pad):
        pb, plen = B_pad - B, l_pad - x.shape[1]
        if pb or plen:
            x = jnp.pad(x, ((0, pb), (0, plen), (0, 0)))
        return x

    qp, kp, vp = pad_bl(q, Lq_pad), pad_bl(k, Lk_pad), pad_bl(v, Lk_pad)

    grid = (B_pad // Bb, Lq_pad // tq, Lk_pad // tk)
    kernel = functools.partial(_flash_attn_kernel, scale_val=scale,
                               lk=Lk, lk_pad=Lk_pad, tk=tk)

    scratch = [
        pltpu.VMEM((Bb, tq, 1), jnp.float32),      # running max m
        pltpu.VMEM((Bb, tq, 1), jnp.float32),      # running denominator l
    ]
    if not acc_in_out:
        scratch.append(pltpu.VMEM((Bb, tq, D), jnp.float32))   # f32 accumulator

    out = pl.pallas_call(
        kernel,
        out_shape=jax.ShapeDtypeStruct((B_pad, Lq_pad, D), q.dtype),
        grid_spec=pltpu.PrefetchScalarGridSpec(
            num_scalar_prefetch=0,
            grid=grid,
            in_specs=[
                pl.BlockSpec((Bb, tq, D), lambda b, qi, ki: (b, qi, 0)),
                # (possible v7x tuning knob: pipeline_mode=pl.Buffered(3) on k/v)
                pl.BlockSpec((Bb, tk, D), lambda b, qi, ki: (b, ki, 0)),
                pl.BlockSpec((Bb, tk, D), lambda b, qi, ki: (b, ki, 0)),
            ],
            out_specs=pl.BlockSpec((Bb, tq, D), lambda b, qi, ki: (b, qi, 0)),
            scratch_shapes=scratch,
        ),
        compiler_params=pltpu.CompilerParams(
            dimension_semantics=("parallel", "parallel", "arbitrary"),
            vmem_limit_bytes=vmem_limit,
        ),
    )(qp, kp, vp)

    if (B_pad, Lq_pad) != (B, Lq):
        out = out[:B, :Lq]
    return out


def _reference(q, k, v, scale=None):
    s = jnp.einsum("bqd,bkd->bqk", q.astype(jnp.float32), k.astype(jnp.float32))
    if scale:
        s = s * scale
    p = jax.nn.softmax(s, axis=2)
    return jnp.einsum("bqk,bkd->bqd", p, v.astype(jnp.float32)).astype(q.dtype)


if __name__ == "__main__":
    key = jax.random.PRNGKey(0)
    key_q, key_k, key_v = jax.random.split(key, 3)

    B, L, D = 2, 8, 32
    q = jax.random.normal(key_q, (B, L, D), dtype=jnp.float32)
    k = jax.random.normal(key_k, (B, L, D), dtype=jnp.float32)
    v = jax.random.normal(key_v, (B, L, D), dtype=jnp.float32)

    scale = 1.0 / (D ** 0.5)

    out = multimodal_attention(q, k, v, scale=scale)
    out = jax.block_until_ready(out)
    ref = _reference(q, k, v, scale=scale)

    assert out.shape == (B, L, D)
    # bf16 MXU operands + approx (EUP) reciprocal -> bf16-level tolerance.
    assert jnp.allclose(out, ref, atol=3e-2, rtol=3e-2), "mismatch vs reference"

    print("KERNEL_OK")
</pallas_src>

<mosaic_0001>
module attributes {stable_mosaic.version = 11 : i64} {
  func.func @_flash_attn_kernel(%arg0: i32, %arg1: i32, %arg2: i32, %arg3: memref<1x8x32xf32, #tpu.memory_space<vmem>>, %arg4: memref<1x8x32xf32, #tpu.memory_space<vmem>>, %arg5: memref<1x8x32xf32, #tpu.memory_space<vmem>>, %arg6: memref<1x8x32xf32, #tpu.memory_space<vmem>>, %arg7: memref<1x8x1xf32, #tpu.memory_space<vmem>>, %arg8: memref<1x8x1xf32, #tpu.memory_space<vmem>>) attributes {dimension_semantics = [#tpu.dimension_semantics<parallel>, #tpu.dimension_semantics<parallel>, #tpu.dimension_semantics<arbitrary>], iteration_bounds = array<i64: 2, 1, 1>, scalar_prefetch = 0 : i64, scratch_operands = 2 : i64, tpu.core_type = #tpu.core_type<tc>, window_params = [{transform_indices = @transform_0, window_bounds = array<i64: 1, 8, 32>}, {transform_indices = @transform_1, window_bounds = array<i64: 1, 8, 32>}, {transform_indices = @transform_2, window_bounds = array<i64: 1, 8, 32>}, {transform_indices = @transform_3, window_bounds = array<i64: 1, 8, 32>}]} {
    %c0_i32 = arith.constant 0 : i32
    %0 = arith.cmpi eq, %arg2, %c0_i32 : i32
    %1 = arith.extui %0 : i1 to i32
    %c0_i32_0 = arith.constant 0 : i32
    %2 = arith.cmpi ne, %1, %c0_i32_0 : i32
    scf.if %2 {
      %cst_33 = arith.constant 0xFF800000 : f32
      %38 = vector.broadcast %cst_33 : f32 to vector<1x8x1xf32>
      %c0_34 = arith.constant 0 : index
      %c0_35 = arith.constant 0 : index
      %c0_36 = arith.constant 0 : index
      %39 = vector.load %arg7[%c0_34, %c0_35, %c0_36] : memref<1x8x1xf32, #tpu.memory_space<vmem>>, vector<1x8x1xf32>
      tpu.vector_store %arg7[%c0_34, %c0_35, %c0_36], %38 {strides = array<i32>} : memref<1x8x1xf32, #tpu.memory_space<vmem>>, vector<1x8x1xf32>,
      %cst_37 = arith.constant 0.000000e+00 : f32
      %40 = vector.broadcast %cst_37 : f32 to vector<1x8x1xf32>
      %c0_38 = arith.constant 0 : index
      %c0_39 = arith.constant 0 : index
      %c0_40 = arith.constant 0 : index
      %41 = vector.load %arg8[%c0_38, %c0_39, %c0_40] : memref<1x8x1xf32, #tpu.memory_space<vmem>>, vector<1x8x1xf32>
      tpu.vector_store %arg8[%c0_38, %c0_39, %c0_40], %40 {strides = array<i32>} : memref<1x8x1xf32, #tpu.memory_space<vmem>>, vector<1x8x1xf32>,
      %cst_41 = arith.constant 0.000000e+00 : f32
      %42 = vector.broadcast %cst_41 : f32 to vector<1x8x32xf32>
      %c0_42 = arith.constant 0 : index
      %c0_43 = arith.constant 0 : index
      %c0_44 = arith.constant 0 : index
      %43 = vector.load %arg6[%c0_42, %c0_43, %c0_44] : memref<1x8x32xf32, #tpu.memory_space<vmem>>, vector<1x8x32xf32>
      tpu.vector_store %arg6[%c0_42, %c0_43, %c0_44], %42 {strides = array<i32>} : memref<1x8x32xf32, #tpu.memory_space<vmem>>, vector<1x8x32xf32>,
    } else {
    }
    %c0 = arith.constant 0 : index
    %c0_1 = arith.constant 0 : index
    %c0_2 = arith.constant 0 : index
    %3 = vector.load %arg3[%c0, %c0_1, %c0_2] : memref<1x8x32xf32, #tpu.memory_space<vmem>>, vector<1x8x32xf32>
    %cst = arith.constant 0.176776692 : f32
    %4 = vector.broadcast %cst : f32 to vector<1x8x32xf32>
    %5 = arith.mulf %3, %4 : vector<1x8x32xf32>
    %6 = arith.truncf %5 : vector<1x8x32xf32> to vector<1x8x32xbf16>
    %c0_3 = arith.constant 0 : index
    %c0_4 = arith.constant 0 : index
    %c0_5 = arith.constant 0 : index
    %7 = vector.load %arg4[%c0_3, %c0_4, %c0_5] : memref<1x8x32xf32, #tpu.memory_space<vmem>>, vector<1x8x32xf32>
    %8 = arith.truncf %7 : vector<1x8x32xf32> to vector<1x8x32xbf16>
    %cst_6 = arith.constant dense<0.000000e+00> : vector<1x8x8xf32>
    %9 = tpu.matmul %6, %8, %cst_6 {dimension_numbers = #tpu.dot_dimension_numbers<[2], [2], [1], [1], [0, 0, 0, 1, 1, 1], [0], [0]>} : vector<1x8x32xbf16>, vector<1x8x32xbf16>, vector<1x8x8xf32> -> vector<1x8x8xf32>
    %c0_7 = arith.constant 0 : index
    %c0_8 = arith.constant 0 : index
    %c0_9 = arith.constant 0 : index
    %10 = vector.load %arg7[%c0_7, %c0_8, %c0_9] : memref<1x8x1xf32, #tpu.memory_space<vmem>>, vector<1x8x1xf32>
    %cst_10 = arith.constant dense<0xFF800000> : vector<1x8xf32>
    %11 = vector.multi_reduction <maximumf>, %9, %cst_10 [2] : vector<1x8x8xf32> to vector<1x8xf32>
    %12 = vector.shape_cast %11 : vector<1x8xf32> to vector<1x8x1xf32>
    %13 = arith.maximumf %10, %12 : vector<1x8x1xf32>
    %14 = arith.subf %10, %13 : vector<1x8x1xf32>
    %15 = math.exp %14 : vector<1x8x1xf32>
    %16 = vector.broadcast %13 : vector<1x8x1xf32> to vector<1x8x8xf32>
    %17 = arith.subf %9, %16 : vector<1x8x8xf32>
    %18 = math.exp %17 : vector<1x8x8xf32>
    %c0_11 = arith.constant 0 : index
    %c0_12 = arith.constant 0 : index
    %c0_13 = arith.constant 0 : index
    %19 = vector.load %arg8[%c0_11, %c0_12, %c0_13] : memref<1x8x1xf32, #tpu.memory_space<vmem>>, vector<1x8x1xf32>
    %20 = arith.mulf %15, %19 : vector<1x8x1xf32>
    %cst_14 = arith.constant dense<0.000000e+00> : vector<1x8xf32>
    %21 = vector.multi_reduction <add>, %18, %cst_14 [2] : vector<1x8x8xf32> to vector<1x8xf32>
    %22 = vector.shape_cast %21 : vector<1x8xf32> to vector<1x8x1xf32>
    %23 = arith.addf %20, %22 : vector<1x8x1xf32>
    %c0_15 = arith.constant 0 : index
    %c0_16 = arith.constant 0 : index
    %c0_17 = arith.constant 0 : index
    %24 = vector.load %arg8[%c0_15, %c0_16, %c0_17] : memref<1x8x1xf32, #tpu.memory_space<vmem>>, vector<1x8x1xf32>
    tpu.vector_store %arg8[%c0_15, %c0_16, %c0_17], %23 {strides = array<i32>} : memref<1x8x1xf32, #tpu.memory_space<vmem>>, vector<1x8x1xf32>,
    %25 = arith.truncf %18 : vector<1x8x8xf32> to vector<1x8x8xbf16>
    %c0_18 = arith.constant 0 : index
    %c0_19 = arith.constant 0 : index
    %c0_20 = arith.constant 0 : index
    %26 = vector.load %arg5[%c0_18, %c0_19, %c0_20] : memref<1x8x32xf32, #tpu.memory_space<vmem>>, vector<1x8x32xf32>
    %27 = arith.truncf %26 : vector<1x8x32xf32> to vector<1x8x32xbf16>
    %cst_21 = arith.constant dense<0.000000e+00> : vector<1x8x32xf32>
    %28 = tpu.matmul %25, %27, %cst_21 {dimension_numbers = #tpu.dot_dimension_numbers<[2], [1], [1], [2], [0, 0, 0, 1, 1, 2], [0], [0]>} : vector<1x8x8xbf16>, vector<1x8x32xbf16>, vector<1x8x32xf32> -> vector<1x8x32xf32>
    %c0_22 = arith.constant 0 : index
    %c0_23 = arith.constant 0 : index
    %c0_24 = arith.constant 0 : index
    %29 = vector.load %arg6[%c0_22, %c0_23, %c0_24] : memref<1x8x32xf32, #tpu.memory_space<vmem>>, vector<1x8x32xf32>
    %30 = vector.broadcast %15 : vector<1x8x1xf32> to vector<1x8x32xf32>
    %31 = arith.mulf %30, %29 : vector<1x8x32xf32>
    %32 = arith.addf %31, %28 : vector<1x8x32xf32>
    %c0_25 = arith.constant 0 : index
    %c0_26 = arith.constant 0 : index
    %c0_27 = arith.constant 0 : index
    %33 = vector.load %arg6[%c0_25, %c0_26, %c0_27] : memref<1x8x32xf32, #tpu.memory_space<vmem>>, vector<1x8x32xf32>
    tpu.vector_store %arg6[%c0_25, %c0_26, %c0_27], %32 {strides = array<i32>} : memref<1x8x32xf32, #tpu.memory_space<vmem>>, vector<1x8x32xf32>,
    %c0_28 = arith.constant 0 : index
    %c0_29 = arith.constant 0 : index
    %c0_30 = arith.constant 0 : index
    %34 = vector.load %arg7[%c0_28, %c0_29, %c0_30] : memref<1x8x1xf32, #tpu.memory_space<vmem>>, vector<1x8x1xf32>
    tpu.vector_store %arg7[%c0_28, %c0_29, %c0_30], %13 {strides = array<i32>} : memref<1x8x1xf32, #tpu.memory_space<vmem>>, vector<1x8x1xf32>,
    %c0_i32_31 = arith.constant 0 : i32
    %35 = arith.cmpi eq, %arg2, %c0_i32_31 : i32
    %36 = arith.extui %35 : i1 to i32
    %c0_i32_32 = arith.constant 0 : i32
    %37 = arith.cmpi ne, %36, %c0_i32_32 : i32
    scf.if %37 {
      %c0_33 = arith.constant 0 : index
      %c0_34 = arith.constant 0 : index
      %c0_35 = arith.constant 0 : index
      %38 = vector.load %arg8[%c0_33, %c0_34, %c0_35] : memref<1x8x1xf32, #tpu.memory_space<vmem>>, vector<1x8x1xf32>
      %39 = tpu.reciprocal %38 {approx = true} : vector<1x8x1xf32> -> vector<1x8x1xf32>
      %c0_36 = arith.constant 0 : index
      %c0_37 = arith.constant 0 : index
      %c0_38 = arith.constant 0 : index
      %40 = vector.load %arg6[%c0_36, %c0_37, %c0_38] : memref<1x8x32xf32, #tpu.memory_space<vmem>>, vector<1x8x32xf32>
      %41 = vector.broadcast %39 : vector<1x8x1xf32> to vector<1x8x32xf32>
      %42 = arith.mulf %40, %41 : vector<1x8x32xf32>
      %c0_39 = arith.constant 0 : index
      %c0_40 = arith.constant 0 : index
      %c0_41 = arith.constant 0 : index
      %43 = vector.load %arg6[%c0_39, %c0_40, %c0_41] : memref<1x8x32xf32, #tpu.memory_space<vmem>>, vector<1x8x32xf32>
      tpu.vector_store %arg6[%c0_39, %c0_40, %c0_41], %42 {strides = array<i32>} : memref<1x8x32xf32, #tpu.memory_space<vmem>>, vector<1x8x32xf32>,
    } else {
    }
    return
  }
  func.func @transform_0(%arg0: i32, %arg1: i32, %arg2: i32) -> (i32, i32, i32) {
    %c0_i32 = arith.constant 0 : i32
    %c0_i32_0 = arith.constant 0 : i32
    return %arg0, %arg1, %c0_i32 : i32, i32, i32
  }
  func.func @transform_1(%arg0: i32, %arg1: i32, %arg2: i32) -> (i32, i32, i32) {
    %c0_i32 = arith.constant 0 : i32
    %c0_i32_0 = arith.constant 0 : i32
    return %arg0, %arg2, %c0_i32 : i32, i32, i32
  }
  func.func @transform_2(%arg0: i32, %arg1: i32, %arg2: i32) -> (i32, i32, i32) {
    %c0_i32 = arith.constant 0 : i32
    %c0_i32_0 = arith.constant 0 : i32
    return %arg0, %arg2, %c0_i32 : i32, i32, i32
  }
  func.func @transform_3(%arg0: i32, %arg1: i32, %arg2: i32) -> (i32, i32, i32) {
    %c0_i32 = arith.constant 0 : i32
    %c0_i32_0 = arith.constant 0 : i32
    return %arg0, %arg1, %c0_i32 : i32, i32, i32
  }
}

</mosaic_0001>

<bundles_post_ra>
// kernel: tpu_custom_call.1
= control target key start
LH: loop header
LB: loop body
LE: loop exit
PB: predicated region body
PF: predicated region fallthrough
CT: control target
= control target key end

     0   :  { %s1028_s0 = inlined_call_operand.hbm [shape: f32[2,8,32], index: 0, kind: input, shape index: {}]   ;;  %s1029_s1 = inlined_call_operand.hbm [shape: f32[2,8,32], index: 1, kind: input, shape index: {}]   ;;  %s1030_s2 = inlined_call_operand.hbm [shape: f32[2,8,32], index: 2, kind: input, shape index: {}]   ;;  %s1031_s3 = inlined_call_operand.hbm [shape: f32[2,8,32], index: 3, kind: output, shape index: {}]  }
   0x1   :  { %1034 = sst [smem:[#allocation17_spill]] %s1029_s1 }
   0x2   :  { %8 = vsyncpa [#allocation5], 0 }
   0x3   :  { %10 = vsyncpa [#allocation5 + $0x1], 0 }
   0x4   :  { %11 = vsyncpa [#allocation8], 0 }
   0x5   :  { %13 = vsyncpa [#allocation8 + $0x1], 0 }
   0x6   :  { %14 = vsyncpa [#allocation6], 0 }
   0x7   :  { %16 = vsyncpa [#allocation6 + $0x1], 0  ;;  %s850_s12 = smov 0   ;;  %s852_s13 = smov 0  }
   0x8   :  { %s854_s14 = smov 0   ;;  %s856_s15 = smov 0  }
   0x9   :  { %s858_s16 = smov 0   ;;  %s860_s17 = smov 0  }
   0xa LB: > { %1035 = sst [smem:[#allocation14_spill]] %s821_s16  ;;  %s881_s18 = sadd.s32 4294967295, %s825_s17   ;;  %s825_s17 = sphi %s860_s17, %s22_s17   ;;  %s821_s16 = sphi %s858_s16, %s1047_s16   ;;  %s817_s15 = sphi %s856_s15, %s1046_s15   ;;  %s813_s14 = sphi %s854_s14, %s1050_s14   ;;  %s809_s13 = sphi %s852_s13, %s1049_s13   ;;  %s805_s12 = sphi %s850_s12, %s1048_s12  }
   0xb   : > { %s545_s19 = sadd.s32 4294967294, %s825_s17   ;;  %s41_s20 = sadd.s32 1, %s821_s16 }
   0xc   : > { %s50_s21 = sadd.s32 1, %s813_s14  ;;  %p43_p0 = scmp.ge.s32.totalorder %s41_s20, 2 }
   0xd   : > { %p57_p1 = scmp.ne.s32.totalorder %s813_s14, %s809_s13  ;;  %p58_p2 = scmp.eq.s32.totalorder %s825_s17, 0 }
   0xe   : > { %p63_p3 = scmp.ne.s32.totalorder %s809_s13, %s805_s12  ;;  %s1052_s20 = smov (%p43_p0, %s41_s20), 0 }
   0xf   : > { %1036 = sst [smem:[#allocation15_spill]] %s1052_s20  ;;  %p893_p4 = por %p58_p2, %p57_p1 }
  0x10   : > { %p64_p5 = scmp.eq.s32.totalorder %s881_s18, 0  ;;  %s45_s23 = ssub.s32 %s821_s16, %s1052_s20 }
  0x11   : > { %p145_p6 = scmp.eq.s32.totalorder %s881_s18, 1  ;;  %p48_p7 = scmp.eq.s32.totalorder %s45_s23, 0 }
  0x12   : > { %p901_p8 = por %p64_p5, %p63_p3  ;;  %p151_p10 = scmp.eq.s32.totalorder %s545_s19, 1 }
  0x13   : > { %p905_p9 = por %p145_p6, %p57_p1  ;;  %p547_p12 = scmp.ge.s32.totalorder %s825_s17, 2 }
  0x14   : > { %s910_s26 = scalar_select %p48_p7, %s813_s14, %s50_s21  }
  0x15   : > { %p912_p11 = por %p151_p10, %p63_p3  ;;  %p587_p13 = scmp.lt.s32.totalorder %s825_s17, 2 }
  0x16   : > { %1040 = sst [smem:[#allocation16_spill]] %s910_s26  ;;  %s171_s28 = sand.u32 1, %s813_s14  }
  0x17   : > { %s548_s29 = sshll.u32 %s171_s28, 3  ;;  %s549_s30 = sshll.u32 %s821_s16, 3 }
  0x18   : > { %p922_p0 = pnand %p587_p13, %p893_p4  ;;  %s191_s5 = sand.u32 1, %s825_s17  }
  0x19   : > { %s1043_s1 = sld [smem:[#allocation17_spill]]  ;;  %s195_s10 = scalar_lea.vmem [#allocation7], %s548_s29 }
  0x1a   : > { %s204_s11 = sshll.u32 %s195_s10, 4  ;;  %s192_s19 = scalar_lea.sflag [#allocation8], %s191_s5  ;;  %s205_s11 = int_to_ptr.vmem [resolvable:$true] %s204_s11 }
  0x1b   : > { %p554_p1 = scmp.ge.s32.totalorder %s825_s17, 1  ;;  %p229_p2 = scmp.lt.s32.totalorder %s825_s17, 3 }
  0x1c   : > { %s180_s6 = scalar_lea.hbm %s1028_s0, %s549_s30  ;;  %s172_s10 = scalar_lea.sflag [#allocation5], %s171_s28 }
  0x1d   : > { %p934_p3 = pnand %p554_p1, %p229_p2  ;;  %s182_s7 = sshll.u32 %s180_s6, 4  ;;  %s183_s7 = int_to_ptr.hbm [resolvable:$true] %s182_s7 }
  0x1e   : > { %s215_s16 = scalar_lea.vmem [#allocation9], %s548_s29  ;;  %s951_s22 = sand.u32 (!%p934_p3), 1, %s809_s13  }
  0x1f   : > { %s200_s8 = scalar_lea.hbm %s1043_s1, %s549_s30  ;;  %s224_s26 = sshll.u32 %s215_s16, 4  ;;  %s225_s26 = int_to_ptr.vmem [resolvable:$true] %s224_s26 }
  0x20   : > { %s202_s9 = sshll.u32 %s200_s8, 4  ;;  %s175_s8 = scalar_lea.vmem [#allocation4], %s548_s29  ;;  %s203_s9 = int_to_ptr.hbm [resolvable:$true] %s202_s9 }
  0x21   : > { %579 = dma.hbm_to_vmem [thread:$0]  (!%p922_p0), %s203_s9, 128, %s205_s11, %s192_s19  }
  0x22   : > { %s184_s1 = sshll.u32 %s175_s8, 4  ;;  %s220_s11 = scalar_lea.hbm %s1030_s2, %s549_s30  ;;  %s185_s1 = int_to_ptr.vmem [resolvable:$true] %s184_s1 }
  0x23   : > { %576 = dma.hbm_to_vmem [thread:$0]  (!%p922_p0), %s183_s7, 128, %s185_s1, %s172_s10  }
  0x24   : > { %s222_s20 = sshll.u32 %s220_s11, 4  ;;  %233 = sbr.rel (%p934_p3) target bundleno = 657 (0x291), region = 32  ;;  %s223_s20 = int_to_ptr.hbm [resolvable:$true] %s222_s20 }
  0x25   : > { %582 = dma.hbm_to_vmem [thread:$0]  (!%p922_p0), %s223_s20, 128, %s225_s26, %s192_s19  }
  0x26   : > { %s954_s1 = sshll.u32 (!%p934_p3), %s951_s22, 3  ;;  %s236_s28 = scalar_lea.sflag (!%p934_p3), [#allocation5], %s951_s22 }
  0x27   : > { %s239_s30 = scalar_lea.vmem (!%p934_p3), [#allocation4], %s954_s1 }
  0x29   : > { %792 = dma.done.wait (%p901_p8), %s236_s28, 128  }
  0x2a   : > { %794 = vsyncadd (%p901_p8), %s236_s28, 4294967168  ;;  %s245_s16 = sand.u32 1, %s881_s18   ;;  %s249_s26 = scalar_lea.vmem [#allocation7], %s954_s1 }
  0x2b   : > { %s246_s20 = scalar_lea.sflag [#allocation8], %s245_s16 }
  0x2c   : > { %796 = dma.done.wait (%p901_p8), %s246_s20, 256  }
  0x2d   : > { %798 = vsyncadd (%p901_p8), %s246_s20, 4294967040  ;;  %vm301_vm0 = vcmask 261120   ;;  %v306_v0 = vld [vmem:[%s249_s26] sm:$0xff]  ;;  %v303_v1 = vld [vmem:[%s239_s30] sm:$0xff]  ;;  %vm298_vm1 = vcmask 7168   ;;  %v827_v6 = vmov -inf  }
  0x2e   : > { %v307_v2 = vpack.c.bf16 %v306_v0, %v306_v0  ;;  %v304_v4 = vmul.f32 0.17677669, %v303_v1  ;;  %299 = vst.msk [vmem:[#allocation2] sm:$0xff] %vm298_vm1, %v827_v6  ;;  %vm329_vm2 = vcmask 64512   ;;  %v828_v10 = vmov 0   ;;  %s259_s18 = scalar_lea.vmem [#allocation9], %s954_s1 }
  0x2f   : > { %640 = vset.pattern.permute.xlu0 %v828_v10  ;;  %641 = vset.pattern.permute.xlu1 %v828_v10  ;;  %v829_v11 = vmov 0.0   ;;  %v354_v16 = vld [vmem:[%s259_s18] sm:$0xff]  ;;  %vm359_vm3 = vcmask 1043456   ;;  %s978_s24 = scalar_lea.vmem [#allocation10], %s954_s1  ;;  %s562_s29 = sshll.u32 %s817_s15, 3 }
  0x30   : > { %v313_v3 = vsel %vm301_vm0, %v307_v2, 0  ;;  %v305_v5 = vpack.c.bf16 %v304_v4, %v304_v4  ;;  %642 = vset.pattern.permute.xlu2 %v828_v10  ;;  %300 = vst.msk [vmem:[#allocation3] sm:$0xff] %vm298_vm1, %v829_v11  ;;  %v355_v17 = vpack.c.bf16 %v354_v16, %v354_v16  ;;  %s411_s21 = scalar_lea.hbm %s1031_s3, %s562_s29  ;;  %s413_s23 = sshll.u32 %s978_s24, 4  ;;  %s414_s23 = int_to_ptr.vmem [resolvable:$true] %s413_s23 }
  0x31   : > { %322 = vmatpush.bf16.xpose.msra.mxu0 %v313_v3  ;;  %302 = vst.msk [vmem:[%s978_s24] sm:$0xff] %vm301_vm0, %v829_v11  ;;  %s415_s6 = sshll.u32 %s411_s21, 4  ;;  %s400_s7 = scalar_lea.sflag [#allocation6], %s951_s22  ;;  %s416_s6 = int_to_ptr.hbm [resolvable:$true] %s415_s6 }
  0x32   : > { %v361_v18 = vsel %vm359_vm3, %v355_v17, 0  ;;  %s753_s8 = sshra.s32 %s416_s6, 4  ;;  %s759_s9 = scalar_lea.hbm %s1031_s3, 16  ;;  %s754_s8 = int_to_ptr.hbm [resolvable:$true] %s753_s8 }
  0x33   : > { %370 = vmatpush.bf16.msra.mxu1 %v361_v18  ;;  %s755_s10 = scalar_lea.hbm %s754_s8, 8  ;;  %p760_p7 = scmp.lt.s32.totalorder %s754_s8, %s1031_s3 }
  0x34   : > { %p756_p4 = scmp.ne.s32.totalorder %s754_s8, %s755_s10  ;;  %p761_p8 = scmp.lt.s32.totalorder %s759_s9, %s755_s10 }
  0x35   : > { %v328_v12 = vld [vmem:[#allocation2] sm:$0xff] }
  0x36   : > { %p757_p5 = pnand %p756_p4, %p905_p9  ;;  %p762_p10 = por %p761_p8, %p760_p7 }
  0x37   : > { %v345_v27 = vld [vmem:[#allocation3] sm:$0xff] }
  0x38   : > { %559 = vmatmul.msk.bf16.vlgmr.msra.gmra.mxu0 %vm301_vm0, %v305_v5  ;;  %v376_v35 = vld [vmem:[%s978_s24] sm:$0xff]  ;;  %p758_p6 = pneg %p757_p5 }
  0x3a   : > { %p763_p13 = pnand %p762_p10, %p758_p6 }
  0xb5   : > { %v324_v7 = vpop.f32.mrf.mxu0 }
  0xb6   : > { %v330_v8 = vsel %vm329_vm2, %v324_v7, -inf }
  0xb7   : > { %331 = vmax.xlane.f32.xlu0 %v330_v8 }
  0xbd   : > { %v326_v9 = vpop.f32.mrf.mxu0 }
 0x12a   : > { %v332_v13 = vpop.xlane.xlu0 %331 }
 0x12b   : > { %v333_v14 = vmax.f32 %v328_v12, %v332_v13 }
 0x12d   : > { %v334_v15 = vsub.f32 %v328_v12, %v333_v14  ;;  %385 = vst.msk [vmem:[#allocation2] sm:$0xff] %vm298_vm1, %v333_v14  ;;  %339 = vperm.xlu0 %640, %v333_v14  }
 0x12f   : > { %v335_v25 = vmul.f32 1.442695, %v334_v15 }
 0x19f   : > { %v340_v19 = vpop.permute.xlu0 %339 }
 0x1a0   : > { %v342_v20 = vsub.f32 %v324_v7, %v340_v19 }
 0x1a2   : > { %v343_v21 = vmul.f32 1.442695, %v342_v20 }
 0x1a4   : > { %643 = vpow2.f32 %v343_v21 }
 0x1a5   : > { %645 = vpow2.f32 %v335_v25 }
 0x1aa   : > { %v644_v22 = vpop.eup %643 }
 0x1ab   : > { %v347_v23 = vsel %vm329_vm2, %v644_v22, 0.0  ;;  %v353_v24 = vpack.c.bf16 %v644_v22, %v644_v22  ;;  %v646_v26 = vpop.eup %645 }
 0x1ac   : > { %348 = vadd.xlane.f32.xlu1 %v347_v23  ;;  %v346_v28 = vmul.f32 %v646_v26, %v345_v27 }
 0x1ad   : > { %560 = vmatmul.msk.bf16.vlgmr.msra.gmra.mxu1 %vm329_vm2, %v353_v24 }
 0x1c5   : > { %379 = vperm.xlu1 %641, %v646_v26  }
 0x21f   : > { %v349_v29 = vpop.xlane.xlu1 %348 }
 0x220   : > { %v350_v30 = vadd.f32 %v349_v29, %v346_v28 }
 0x222   : > { %352 = vst.msk [vmem:[#allocation3] sm:$0xff] %vm298_vm1, %v350_v30 }
 0x229   : > { %v389_v31 = vld [vmem:[#allocation3] sm:$0xff] }
 0x22a   : > { %v372_v32 = vpop.f32.mrf.mxu1  ;;  %647 = vrcp.f32 %v389_v31 }
 0x230   : > { %v648_v33 = vpop.eup %647 }
 0x231   : > { %394 = vperm.xlu2 %642, %v648_v33  }
 0x232   : > { %v374_v34 = vpop.f32.mrf.mxu1 }
 0x237   : > { %v380_v36 = vpop.permute.xlu1 %379 }
 0x238   : > { %v382_v37 = vmul.f32 %v380_v36, %v376_v35 }
 0x23a   : > { %v383_v38 = vadd.f32 %v382_v37, %v372_v32 }
 0x23c   : > { %384 = vst.msk [vmem:[%s978_s24] sm:$0xff] %vm301_vm0, %v383_v38 }
 0x243   : > { %v391_v39 = vld [vmem:[%s978_s24] sm:$0xff] }
 0x28b   : > { %v395_v40 = vpop.permute.xlu2 %394 }
 0x28c   : > { %v397_v41 = vmul.f32 %v395_v40, %v391_v39 }
 0x28e   : > { %398 = vst.msk [vmem:[%s978_s24] sm:$0xff] %vm301_vm0, %v397_v41 }
 0x28f   : > { %766 = shalt.err (!%p763_p13)
}
 0x290   : > { %571 = dma.vmem_to_hbm [thread:$0]  (%p905_p9), %s414_s23, 128, %s416_s6, %s400_s7  }
 0x291 PF: > { %s427_s22 = sand.u32 1, %s805_s12   ;;  %p584_p0 = pnand %p547_p12, %p912_p11 }
 0x292   : > { %s428_s28 = scalar_lea.sflag [#allocation6], %s427_s22 }
 0x293   : > { %p585_p1 = pneg %p584_p0 }
 0x295   : > { %800 = dma.done.wait (%p585_p1), %s428_s28, 128  }
 0x296   : > { %802 = vsyncadd (%p585_p1), %s428_s28, 4294967168  ;;  %s22_s17 = sadd.s32 1, %s825_s17   ;;  %s1045_s30 = sld [smem:[#allocation16_spill]] }
 0x297   : > { %p19_p2 = scmp.ge.s32.totalorder %s22_s17, 4   ;;  %s1046_s15 = sld [smem:[#allocation14_spill]] }
 0x298   : > { %s1047_s16 = sld [smem:[#allocation15_spill]]  ;;  %s1048_s12 = smov %s809_s13 }
 0x299   : > { %s1049_s13 = smov %s813_s14  ;;  %21 = sbr.rel (!%p19_p2) target bundleno = 10 (0xa), region = 109 }
 0x29c   : > { %s1050_s14 = smov %s1045_s30 }
 0x29e   :  { %434 = vsyncpa [#allocation5], 1 }
 0x29f   :  { %436 = vsyncpa [#allocation5 + $0x1], 1 }
 0x2a0   :  { %437 = vsyncpa [#allocation8], 1 }
 0x2a1   :  { %439 = vsyncpa [#allocation8 + $0x1], 1 }
 0x2a2   :  { %440 = vsyncpa [#allocation6], 1 }
 0x2a3   :  { %442 = vsyncpa [#allocation6 + $0x1], 1 }

</bundles_post_ra>
